<compile_context>
chip_gen: v7x
topology: tpu7x:2x2x1
jax: 0.10.0
libtpu: 0.0.40
codegen_flags: <defaults>
</compile_context>

<pallas_src>
import jax
import jax.numpy as jnp
from jax.experimental import pallas as pl
from jax.experimental.pallas import tpu as pltpu


def _round_up(x: int, m: int) -> int:
    return ((x + m - 1) // m) * m


def _pose_encoder_kernel(x_ref, w1_ref, b1_ref, w2_ref, b2_ref, o_ref):
    # Layer 1: cast x -> bf16 in-kernel (VPU, hidden under the DMA), bf16 MXU
    # operands, f32 accumulation; bias add + ReLU in f32.
    x_bf = x_ref[...].astype(jnp.bfloat16)
    h = jnp.dot(x_bf, w1_ref[...], preferred_element_type=jnp.float32)
    h = jnp.maximum(h + b1_ref[...], 0.0)          # b1 is [1, hidden], broadcasts
    # Layer 2: cast the [TB, 256] intermediate to bf16 (halves its VMEM
    # footprint, fast bf16 MXU path on v6e/v7x), accumulate in f32.
    y = jnp.dot(h.astype(jnp.bfloat16), w2_ref[...],
                preferred_element_type=jnp.float32)
    o_ref[...] = (y + b2_ref[...]).astype(o_ref.dtype)


def pose_encoder(x, w1, b1, w2, b2, *, tb=2048, out_dtype=jnp.float32):
    """
    x  : [B, in_features]  float32
    w1 : [in_features, 256], b1: [1, 256]
    w2 : [256, out_features], b2: [1, out_features]
    returns [B, out_features] in `out_dtype` (default f32; pass jnp.bfloat16 to
    halve the dominant output write stream if downstream tolerates it).
    """
    B, in_features = x.shape
    hidden = w1.shape[1]
    out_features = w2.shape[1]

    # Pad the batch only to the f32 sublane granularity (8 rows). This is a
    # no-op for typical batch sizes and never blows up to a full TB multiple.
    B_pad = _round_up(max(B, 8), 8)
    x_in = x if B_pad == B else jnp.pad(x, ((0, B_pad - B), (0, 0)))

    # Batch tile: multiple of 8. Big enough to amortize the ~0.35us per-step
    # overhead; for large batches cap it so the grid has >= 4 steps (keeps the
    # DMA pipeline busy and lets ("parallel",) use both TensorCores on v7x).
    TB = min(tb, B_pad)
    if B_pad >= 4 * 512:
        TB = min(TB, max(512, _round_up(pl.cdiv(B_pad, 4), 8)))
    TB = _round_up(TB, 8)
    num_steps = pl.cdiv(B_pad, TB)   # partial last tile handled by Mosaic

    # Weights are tiny: cast once in the wrapper (negligible HBM traffic).
    w1_bf = w1.astype(jnp.bfloat16)
    w2_bf = w2.astype(jnp.bfloat16)
    b1_f = b1.astype(jnp.float32)
    b2_f = b2.astype(jnp.float32)

    out_itemsize = jnp.dtype(out_dtype).itemsize
    cost = pl.CostEstimate(
        flops=2 * B_pad * (in_features * hidden + hidden * out_features),
        transcendentals=0,
        bytes_accessed=(B_pad * in_features * 4                 # x (f32)
                        + B_pad * out_features * out_itemsize   # out
                        + in_features * hidden * 2              # W1 (bf16)
                        + hidden * out_features * 2             # W2 (bf16)
                        + hidden * 4 + out_features * 4         # biases (f32)
                        ),
    )

    # Rough VMEM footprint (double-buffered x/out tiles, lane-padded, plus the
    # f32 + bf16 hidden temporaries and the resident weights). TB=2048 -> ~8 MiB.
    vmem_est = (2 * TB * _round_up(in_features, 128) * 4
                + 2 * TB * _round_up(out_features, 128) * out_itemsize
                + TB * hidden * (4 + 2)
                + in_features * hidden * 2 + hidden * out_features * 2
                + (hidden + out_features) * 4)
    vmem_limit = max(32 * 1024 * 1024, int(1.5 * vmem_est))

    out = pl.pallas_call(
        _pose_encoder_kernel,
        out_shape=jax.ShapeDtypeStruct((B_pad, out_features), out_dtype),
        grid=(num_steps,),
        in_specs=[
            pl.BlockSpec((TB, in_features), lambda i: (i, 0)),        # x tile (pipelined)
            pl.BlockSpec((in_features, hidden), lambda i: (0, 0)),    # W1 (VMEM-resident)
            pl.BlockSpec((1, hidden), lambda i: (0, 0)),              # b1 (VMEM-resident)
            pl.BlockSpec((hidden, out_features), lambda i: (0, 0)),   # W2 (VMEM-resident)
            pl.BlockSpec((1, out_features), lambda i: (0, 0)),        # b2 (VMEM-resident)
        ],
        out_specs=pl.BlockSpec((TB, out_features), lambda i: (i, 0)),
        compiler_params=pltpu.CompilerParams(
            dimension_semantics=("parallel",),   # batch tiles independent; megacore on v7x
            vmem_limit_bytes=vmem_limit,
        ),
        cost_estimate=cost,
    )(x_in, w1_bf, b1_f, w2_bf, b2_f)

    return out[:B] if B_pad != B else out


def init_params(key, in_features, hidden=256, out_features=128):
    """Deterministic synthetic parameters (PyTorch Linear-style uniform init)."""
    k1, k2, k3, k4 = jax.random.split(key, 4)
    bound1 = 1.0 / (in_features ** 0.5)
    bound2 = 1.0 / (hidden ** 0.5)
    w1 = jax.random.uniform(k1, (in_features, hidden), jnp.float32, -bound1, bound1)
    b1 = jax.random.uniform(k2, (1, hidden), jnp.float32, -bound1, bound1)
    w2 = jax.random.uniform(k3, (hidden, out_features), jnp.float32, -bound2, bound2)
    b2 = jax.random.uniform(k4, (1, out_features), jnp.float32, -bound2, bound2)
    return w1, b1, w2, b2


if __name__ == "__main__":
    # Small shapes consistent with the module: flattened 3D pose vector,
    # e.g. 17 joints x 3 coords = 51 input features, batch of 8.
    B, IN_FEATURES, HIDDEN, OUT_FEATURES = 8, 51, 256, 128

    key = jax.random.PRNGKey(0)
    kx, kp = jax.random.split(key)
    x = jax.random.normal(kx, (B, IN_FEATURES), jnp.float32)
    w1, b1, w2, b2 = init_params(kp, IN_FEATURES, HIDDEN, OUT_FEATURES)

    out = pose_encoder(x, w1, b1, w2, b2)
    out = jax.block_until_ready(out)

    # Reference check in plain JAX (same semantics as the PyTorch forward).
    # Tolerance loosened vs f32 reference because matmul operands are bf16
    # (accumulation stays f32 in the kernel).
    ref = jnp.maximum(x @ w1 + b1, 0.0) @ w2 + b2
    assert out.shape == (B, OUT_FEATURES)
    assert out.dtype == jnp.float32
    assert jnp.allclose(out, ref, atol=2e-2, rtol=2e-2)

    print("KERNEL_OK")
</pallas_src>

<mosaic_0001>
module attributes {stable_mosaic.version = 11 : i64} {
  func.func @_pose_encoder_kernel(%arg0: i32, %arg1: memref<8x51xf32, #tpu.memory_space<vmem>>, %arg2: memref<51x256xbf16, #tpu.memory_space<vmem>>, %arg3: memref<1x256xf32, #tpu.memory_space<vmem>>, %arg4: memref<256x128xbf16, #tpu.memory_space<vmem>>, %arg5: memref<1x128xf32, #tpu.memory_space<vmem>>, %arg6: memref<8x128xf32, #tpu.memory_space<vmem>>) attributes {dimension_semantics = [#tpu.dimension_semantics<parallel>], iteration_bounds = array<i64: 1>, scalar_prefetch = 0 : i64, scratch_operands = 0 : i64, tpu.core_type = #tpu.core_type<tc>, window_params = [{transform_indices = @transform_0, window_bounds = array<i64: 8, 51>}, {pipeline_mode = #tpu.pipeline_mode<synchronous>, transform_indices = @transform_1, window_bounds = array<i64: 51, 256>}, {pipeline_mode = #tpu.pipeline_mode<synchronous>, transform_indices = @transform_2, window_bounds = array<i64: 1, 256>}, {pipeline_mode = #tpu.pipeline_mode<synchronous>, transform_indices = @transform_3, window_bounds = array<i64: 256, 128>}, {pipeline_mode = #tpu.pipeline_mode<synchronous>, transform_indices = @transform_4, window_bounds = array<i64: 1, 128>}, {transform_indices = @transform_5, window_bounds = array<i64: 8, 128>}]} {
    %c0 = arith.constant 0 : index
    %c0_0 = arith.constant 0 : index
    %0 = vector.load %arg1[%c0, %c0_0] : memref<8x51xf32, #tpu.memory_space<vmem>>, vector<8x51xf32>
    %1 = arith.truncf %0 : vector<8x51xf32> to vector<8x51xbf16>
    %c0_1 = arith.constant 0 : index
    %c0_2 = arith.constant 0 : index
    %2 = vector.load %arg2[%c0_1, %c0_2] : memref<51x256xbf16, #tpu.memory_space<vmem>>, vector<51x256xbf16>
    %cst = arith.constant dense<0.000000e+00> : vector<8x256xf32>
    %3 = tpu.matmul %1, %2, %cst {dimension_numbers = #tpu.dot_dimension_numbers<[1], [0], [0], [1], [0, 0, 1, 1], [], []>} : vector<8x51xbf16>, vector<51x256xbf16>, vector<8x256xf32> -> vector<8x256xf32>
    %c0_3 = arith.constant 0 : index
    %c0_4 = arith.constant 0 : index
    %4 = vector.load %arg3[%c0_3, %c0_4] : memref<1x256xf32, #tpu.memory_space<vmem>>, vector<1x256xf32>
    %5 = vector.broadcast %4 : vector<1x256xf32> to vector<8x256xf32>
    %6 = arith.addf %3, %5 : vector<8x256xf32>
    %cst_5 = arith.constant 0.000000e+00 : f32
    %7 = vector.broadcast %cst_5 : f32 to vector<8x256xf32>
    %8 = arith.maximumf %6, %7 : vector<8x256xf32>
    %9 = arith.truncf %8 : vector<8x256xf32> to vector<8x256xbf16>
    %c0_6 = arith.constant 0 : index
    %c0_7 = arith.constant 0 : index
    %10 = vector.load %arg4[%c0_6, %c0_7] : memref<256x128xbf16, #tpu.memory_space<vmem>>, vector<256x128xbf16>
    %cst_8 = arith.constant dense<0.000000e+00> : vector<8x128xf32>
    %11 = tpu.matmul %9, %10, %cst_8 {dimension_numbers = #tpu.dot_dimension_numbers<[1], [0], [0], [1], [0, 0, 1, 1], [], []>} : vector<8x256xbf16>, vector<256x128xbf16>, vector<8x128xf32> -> vector<8x128xf32>
    %c0_9 = arith.constant 0 : index
    %c0_10 = arith.constant 0 : index
    %12 = vector.load %arg5[%c0_9, %c0_10] : memref<1x128xf32, #tpu.memory_space<vmem>>, vector<1x128xf32>
    %13 = vector.broadcast %12 : vector<1x128xf32> to vector<8x128xf32>
    %14 = arith.addf %11, %13 : vector<8x128xf32>
    %c0_11 = arith.constant 0 : index
    %c0_12 = arith.constant 0 : index
    %15 = vector.load %arg6[%c0_11, %c0_12] : memref<8x128xf32, #tpu.memory_space<vmem>>, vector<8x128xf32>
    tpu.vector_store %arg6[%c0_11, %c0_12], %14 {strides = array<i32>} : memref<8x128xf32, #tpu.memory_space<vmem>>, vector<8x128xf32>,
    return
  }
  func.func @transform_0(%arg0: i32) -> (i32, i32) {
    %c0_i32 = arith.constant 0 : i32
    %c0_i32_0 = arith.constant 0 : i32
    return %arg0, %c0_i32 : i32, i32
  }
  func.func @transform_1(%arg0: i32) -> (i32, i32) {
    %c0_i32 = arith.constant 0 : i32
    %c0_i32_0 = arith.constant 0 : i32
    %c0_i32_1 = arith.constant 0 : i32
    return %c0_i32, %c0_i32_0 : i32, i32
  }
  func.func @transform_2(%arg0: i32) -> (i32, i32) {
    %c0_i32 = arith.constant 0 : i32
    %c0_i32_0 = arith.constant 0 : i32
    %c0_i32_1 = arith.constant 0 : i32
    return %c0_i32, %c0_i32_0 : i32, i32
  }
  func.func @transform_3(%arg0: i32) -> (i32, i32) {
    %c0_i32 = arith.constant 0 : i32
    %c0_i32_0 = arith.constant 0 : i32
    %c0_i32_1 = arith.constant 0 : i32
    return %c0_i32, %c0_i32_0 : i32, i32
  }
  func.func @transform_4(%arg0: i32) -> (i32, i32) {
    %c0_i32 = arith.constant 0 : i32
    %c0_i32_0 = arith.constant 0 : i32
    %c0_i32_1 = arith.constant 0 : i32
    return %c0_i32, %c0_i32_0 : i32, i32
  }
  func.func @transform_5(%arg0: i32) -> (i32, i32) {
    %c0_i32 = arith.constant 0 : i32
    %c0_i32_0 = arith.constant 0 : i32
    return %arg0, %c0_i32 : i32, i32
  }
}

</mosaic_0001>

<bundles_post_ra>
// kernel: tpu_custom_call.1
= control target key start
LH: loop header
LB: loop body
LE: loop exit
PB: predicated region body
PF: predicated region fallthrough
CT: control target
= control target key end

     0   :  { %10 = vsyncpa [#allocation3], 0  ;;  %s641_s0 = inlined_call_operand.hbm [shape: f32[8,51], index: 0, kind: input, shape index: {}]   ;;  %s642_s1 = inlined_call_operand.hbm [shape: bf16[51,256], index: 1, kind: input, shape index: {}]   ;;  %s643_s2 = inlined_call_operand.vmem [shape: f32[1,256], index: 2, kind: input, shape index: {}]   ;;  %s644_s3 = inlined_call_operand.hbm [shape: bf16[256,128], index: 3, kind: input, shape index: {}]   ;;  %s645_s4 = inlined_call_operand.vmem [shape: f32[1,128], index: 4, kind: input, shape index: {}]   ;;  %s646_s5 = inlined_call_operand.hbm [shape: f32[8,128], index: 5, kind: output, shape index: {}]  }
   0x1   :  { %11 = vsyncpa [#allocation6], 0 }
   0x2   :  { %12 = vsyncpa [#allocation4], 0  ;;  %s547_s18 = smov [#allocation5]   ;;  %s453_s22 = scalar_lea.hbm %s642_s1, 896 }
   0x3   :  { %s28_s19 = sshll.u32 %s547_s18, 4  ;;  %p454_p0 = scmp.ne.s32.totalorder %s642_s1, %s453_s22  ;;  %s29_s19 = int_to_ptr.vmem [resolvable:$true] %s28_s19 }
   0x4   :  { %p457_p1 = scmp.lt.u32.totalorder %s453_s22, %s642_s1 }
   0x6   :  { %p459_p2 = pnand %p457_p1, %p454_p0 }
   0x8   :  { %462 = shalt.err (!%p459_p2)
}
   0x9   :  { %s463_s27 = scalar_lea.vmem %s29_s19, 896  ;;  %p468_p4 = scmp.lt.s32.totalorder %s29_s19, %s29_s19 }
   0xa   :  { %p464_p3 = scmp.ne.s32.totalorder %s29_s19, %s463_s27  ;;  %p469_p5 = scmp.lt.s32.totalorder %s463_s27, %s463_s27 }
   0xc   :  { %p470_p6 = por %p469_p5, %p468_p4 }
   0xe   :  { %p471_p7 = pnand %p470_p6, %p464_p3 }
  0x10   :  { %474 = shalt.err (!%p471_p7)
}
  0x11   :  { %s548_s28 = smov 128   ;;  %s549_s29 = smov 8  }
  0x12   :  { %34 = dma.hbm_to_vmem [thread:$0]  %s642_s1, 896, %s29_s19, [#allocation6], %s548_s28, %s548_s28, %s549_s29  }
  0x13   :  { %s550_s7 = smov [#allocation2]   ;;  %s551_s9 = smov [#allocation7]  }
  0x14   :  { %s19_s8 = sshll.u32 %s550_s7, 4  ;;  %s42_s10 = sshll.u32 %s551_s9, 4  ;;  %s20_s8 = int_to_ptr.vmem [resolvable:$true] %s19_s8  ;;  %s43_s10 = int_to_ptr.vmem [resolvable:$true] %s42_s10 }
  0x15   :  { %s475_s13 = scalar_lea.hbm %s641_s0, 128 }
  0x16   :  { %p476_p8 = scmp.ne.s32.totalorder %s641_s0, %s475_s13  ;;  %p479_p9 = scmp.lt.u32.totalorder %s475_s13, %s641_s0 }
  0x18   :  { %p481_p10 = pnand %p479_p9, %p476_p8 }
  0x1a   :  { %484 = shalt.err (!%p481_p10)
}
  0x1b   :  { %s485_s1 = scalar_lea.vmem %s20_s8, 128  ;;  %p490_p12 = scmp.lt.s32.totalorder %s20_s8, %s20_s8 }
  0x1c   :  { %p486_p11 = scmp.ne.s32.totalorder %s20_s8, %s485_s1  ;;  %p491_p13 = scmp.lt.s32.totalorder %s485_s1, %s485_s1 }
  0x1e   :  { %p492_p0 = por %p491_p13, %p490_p12 }
  0x20   :  { %p493_p1 = pnand %p492_p0, %p486_p11 }
  0x22   :  { %496 = shalt.err (!%p493_p1)
}
  0x23   :  { %22 = dma.hbm_to_vmem [thread:$0]  %s641_s0, 128, %s20_s8, [#allocation3]  }
  0x24   :  { %s497_s22 = scalar_lea.hbm %s644_s3, 2048 }
  0x25   :  { %p498_p2 = scmp.ne.s32.totalorder %s644_s3, %s497_s22  ;;  %p501_p3 = scmp.lt.u32.totalorder %s497_s22, %s644_s3 }
  0x27   :  { %p503_p4 = pnand %p501_p3, %p498_p2 }
  0x29   :  { %506 = shalt.err (!%p503_p4)
}
  0x2a   :  { %s507_s27 = scalar_lea.vmem %s43_s10, 2048  ;;  %p512_p6 = scmp.lt.s32.totalorder %s43_s10, %s43_s10 }
  0x2b   :  { %p508_p5 = scmp.ne.s32.totalorder %s43_s10, %s507_s27  ;;  %p513_p7 = scmp.lt.s32.totalorder %s507_s27, %s507_s27 }
  0x2d   :  { %p514_p8 = por %p513_p7, %p512_p6 }
  0x2f   :  { %p515_p9 = pnand %p514_p8, %p508_p5 }
  0x31   :  { %518 = shalt.err (!%p515_p9)
}
  0x32   :  { %s552_s0 = smov 64   ;;  %s553_s28 = smov 4  }
  0x33   :  { %48 = dma.hbm_to_vmem [thread:$0]  %s644_s3, 2048, %s43_s10, [#allocation6], %s552_s0, %s552_s0, %s553_s28  }
  0x34   :  { %541 = dma.done.wait [#allocation3], 128  }
  0x35   :  { %542 = vsyncadd [#allocation3], 4294967168 }
  0x36   :  { %543 = dma.done.wait [#allocation6], 2944  }
  0x37   :  { %544 = vsyncadd [#allocation6], 4294964352  ;;  %v554_v0 = vmov 0   ;;  %vm121_vm0 = vcmask 1040384   ;;  %v426_v1 = vld [vmem:[#allocation5 + $0x4] ss:$8 sps:$4 sm:$0xff]   ;;  %v72_v33 = vlaneseq }
  0x38   :  { %163 = vmatprep.mubr.bf16.mxu0 %v554_v0  ;;  %v428_v2 = vld [vmem:[#allocation5] ss:$8 sps:$4 sm:$0xff]   ;;  %131 = vmatprep.subr.bf16.mxu0 %v426_v1  ;;  %v429_v3 = vld [vmem:[#allocation5 + $0x14] ss:$8 sps:$4 sm:$0xff]   ;;  %vm122_vm1 = vcmask 1041408   ;;  %v555_v4 = vmov 65535  }
  0x39   :  { %v123_v5 = vsel %vm121_vm0, 4294967295, %v555_v4  ;;  %132 = vmatpush1.bf16.msra.mxu0 %v428_v2  ;;  %v431_v6 = vld [vmem:[#allocation5 + $0x10] ss:$8 sps:$4 sm:$0xff]   ;;  %v432_v7 = vld [vmem:[#allocation5 + $0x24] ss:$8 sps:$4 sm:$0xff]   ;;  %vm117_vm2 = vcmask 416768  }
  0x3a   :  { %133 = vmatprep.subr.bf16.mxu0 %v429_v3  ;;  %v69_v8 = vld [vmem:[#allocation5 + $0x30] sm:$0x33]  ;;  %v434_v9 = vld [vmem:[#allocation5 + $0x20] ss:$8 sps:$4 sm:$0xff]   ;;  %v124_v11 = vsel %vm122_vm1, %v123_v5, 0  ;;  %v437_v12 = vld [vmem:[#allocation7 + $0x40] sm:$0xff]  }
  0x3b   :  { %v375_v10 = vcombine.high %v69_v8, %v69_v8  ;;  %v438_v13 = vld [vmem:[#allocation7] sm:$0xff]   ;;  %v374_v14 = vcombine.low %v69_v8, %v69_v8  ;;  %394 = vmatprep.subr.bf16.mxu1 %v437_v12  ;;  %v439_v15 = vld [vmem:[#allocation7 + $0x48] sm:$0xff]   ;;  %v441_v18 = vld [vmem:[#allocation7 + $0x50] sm:$0xff]   ;;  %v73_v34 = vshrl.u32 %v72_v33, 7 }
  0x3c   :  { %395 = vmatpush3.bf16.msra.mxu1 %v438_v13  ;;  %v440_v17 = vld [vmem:[#allocation7 + $0x8] sm:$0xff]   ;;  %v61_v20 = vld [vmem:[#allocation2] sm:$0xff]  ;;  %v442_v21 = vld [vmem:[#allocation7 + $0x10] sm:$0xff]  }
  0x3d   :  { %134 = vmatpush1.bf16.msra.mxu0 %v431_v6  ;;  %v129_v16 = vand.u32 %v375_v10, %v124_v11  ;;  %396 = vmatprep.subr.bf16.mxu1 %v439_v15  ;;  %v126_v19 = vand.u32 %v374_v14, %v124_v11  ;;  %v443_v22 = vld [vmem:[#allocation7 + $0x58] sm:$0xff]   ;;  %v62_v23 = vpack.c.bf16 %v61_v20, %v61_v20  ;;  %v445_v25 = vld [vmem:[#allocation7 + $0x60] sm:$0xff]   ;;  %v447_v27 = vld [vmem:[#allocation7 + $0x68] sm:$0xff]   ;;  %v74_v35 = vsub.s32 0, %v73_v34 }
  0x3e   :  { %135 = vmatprep.subr.bf16.mxu0 %v432_v7  ;;  %v444_v24 = vld [vmem:[#allocation7 + $0x18] sm:$0xff]   ;;  %v446_v26 = vld [vmem:[#allocation7 + $0x20] sm:$0xff]   ;;  %v448_v28 = vld [vmem:[#allocation7 + $0x28] sm:$0xff]   ;;  %v78_v37 = vsub.s32 1, %v73_v34 }
  0x3f   :  { %v449_v29 = vld [vmem:[#allocation7 + $0x70] sm:$0xff]   ;;  %v451_v31 = vld [vmem:[#allocation7 + $0x78] sm:$0xff]   ;;  %v70_v36 = vld [vmem:[%s643_s2] sm:$0x3]  ;;  %s556_s2 = smov [#allocation8]  }
  0x40   :  { %397 = vmatpush3.bf16.msra.mxu1 %v440_v17  ;;  %v450_v30 = vld [vmem:[#allocation7 + $0x30] sm:$0xff]   ;;  %v452_v32 = vld [vmem:[#allocation7 + $0x38] sm:$0xff]   ;;  %v75_v38 = vrot.slane %v70_v36, %v74_v35  ;;  %v79_v39 = vrot.slane %v70_v36, %v78_v37  ;;  %v377_v51 = vld [vmem:[%s645_s4] ss:$0 sm:$0xff]  ;;  %s358_s9 = sshll.u32 %s556_s2, 4  ;;  %s359_s9 = int_to_ptr.vmem [resolvable:$true] %s358_s9 }
  0x41   :  { %136 = vmatpush1.bf16.msra.mxu0 %v434_v9  ;;  %398 = vmatprep.subr.bf16.mxu1 %v441_v18  ;;  %s519_s10 = scalar_lea.vmem %s359_s9, 128  ;;  %p524_p11 = scmp.lt.s32.totalorder %s359_s9, %s359_s9 }
  0x42   :  { %137 = vmatprep.subr.bf16.mxu0 %v129_v16  ;;  %p520_p10 = scmp.ne.s32.totalorder %s359_s9, %s519_s10  ;;  %p525_p12 = scmp.lt.s32.totalorder %s519_s10, %s519_s10 }
  0x44   :  { %399 = vmatpush3.bf16.msra.mxu1 %v442_v21  ;;  %p526_p13 = por %p525_p12, %p524_p11 }
  0x45   :  { %138 = vmatpush1.bf16.msra.mxu0 %v126_v19  ;;  %400 = vmatprep.subr.bf16.mxu1 %v443_v22 }
  0x46   :  { %p527_p0 = pnand %p526_p13, %p520_p10 }
  0x48   :  { %376 = vmatmul.mubr.msk.bf16.vlgmr.msra.gmra.mrb[0].mxu0 %vm117_vm2, %v62_v23  ;;  %401 = vmatpush3.bf16.msra.mxu1 %v444_v24 }
  0x49   :  { %402 = vmatprep.subr.bf16.mxu1 %v445_v25 }
  0x4c   :  { %403 = vmatpush3.bf16.msra.mxu1 %v446_v26 }
  0x4d   :  { %404 = vmatprep.subr.bf16.mxu1 %v447_v27 }
  0x50   :  { %405 = vmatpush3.bf16.msra.mxu1 %v448_v28 }
  0x51   :  { %406 = vmatprep.subr.bf16.mxu1 %v449_v29 }
  0x54   :  { %407 = vmatpush3.bf16.msra.mxu1 %v450_v30 }
  0x55   :  { %408 = vmatprep.subr.bf16.mxu1 %v451_v31 }
  0x58   :  { %409 = vmatpush3.bf16.msra.mxu1 %v452_v32 }
 0x11b   :  { %v165_v40 = vpop.f32.mrb[0].mxu0 }
 0x11c   :  { %v166_v41 = vadd.f32 %v165_v40, %v75_v38  ;;  %v167_v42 = vpop.f32.mrb[1].mxu0 }
 0x11d   :  { %v168_v43 = vadd.f32 %v167_v42, %v79_v39  ;;  %v169_v44 = vpop.f32.mrb[2].mxu0 }
 0x11e   :  { %v172_v45 = vmax.f32 %v166_v41, 0.0  ;;  %v170_v46 = vpop.f32.mrb[3].mxu0 }
 0x11f   :  { %v173_v47 = vmax.f32 %v168_v43, 0.0 }
 0x120   :  { %v174_v49 = vpack.c.bf16 %v172_v45, %v172_v45 }
 0x121   :  { %v175_v48 = vpack.c.bf16 %v173_v47, %v173_v47 }
 0x123   :  { %343 = vmatprep.mubr.bf16.mxu1 %v175_v48 }
 0x124   :  { %344 = vmatmul.mubr.bf16.vlgmr.msra.gmra.mrb[0].mxu1 %v174_v49 }
 0x1f7   :  { %v410_v50 = vpop.f32.mrb[0].mxu1 }
 0x1f8   :  { %v411_v52 = vpop.f32.mrb[1].mxu1 }
 0x1f9   :  { %v412_v53 = vadd.f32 %v411_v52, %v410_v50  ;;  %v413_v54 = vpop.f32.mrb[2].mxu1 }
 0x1fa   :  { %v414_v55 = vpop.f32.mrb[3].mxu1 }
 0x1fb   :  { %v346_v56 = vadd.f32 %v412_v53, %v377_v51 }
 0x1fd   :  { %351 = vst [vmem:[#allocation8] sm:$0xff] %v346_v56 }
 0x1fe   :  { %530 = shalt.err (!%p527_p0)
}
 0x1ff   :  { %s531_s4 = scalar_lea.hbm %s646_s5, 128 }
 0x200   :  { %p532_p1 = scmp.ne.s32.totalorder %s646_s5, %s531_s4  ;;  %p535_p2 = scmp.lt.u32.totalorder %s531_s4, %s646_s5 }
 0x202   :  { %p537_p3 = pnand %p535_p2, %p532_p1 }
 0x204   :  { %540 = shalt.err (!%p537_p3)
}
 0x205   :  { %361 = dma.vmem_to_hbm [thread:$0]  %s359_s9, 128, %s646_s5, [#allocation4]  }
 0x206   :  { %545 = dma.done.wait [#allocation4], 128  }
 0x207   :  { %546 = vsyncadd [#allocation4], 4294967168 }
 0x208   :  { %365 = vsyncpa [#allocation3], 1 }
 0x209   :  { %366 = vsyncpa [#allocation6], 1 }
 0x20a   :  { %367 = vsyncpa [#allocation4], 1 }

</bundles_post_ra>
